<compile_context>
chip_gen: v7x
topology: tpu7x:2x2x1
jax: 0.10.0
libtpu: 0.0.40
codegen_flags: <defaults>
</compile_context>

<pallas_src>
import functools

import jax
import jax.numpy as jnp
from jax.experimental import pallas as pl
from jax.experimental.pallas import tpu as pltpu

INPUT_SIZE = 5
HIDDEN_SIZE = 128
HIDDEN2_SIZE = HIDDEN_SIZE // 2   # 64
OUTPUT_SIZE = 3


def _mlp_kernel(x_ref, w1_ref, b1_ref, w2_ref, b2_ref, w3_ref, b3_ref, o_ref):
    # fc1 + ReLU (accumulate in f32 on the MXU; bias/ReLU epilogue in f32 — v5e-safe)
    h1 = jnp.dot(x_ref[...], w1_ref[...], preferred_element_type=jnp.float32)
    h1 = jnp.maximum(h1 + b1_ref[...], 0.0)
    # dropout(p=0.2) in eval mode == identity
    # fc2 + ReLU
    h2 = jnp.dot(h1.astype(w2_ref.dtype), w2_ref[...],
                 preferred_element_type=jnp.float32)
    h2 = jnp.maximum(h2 + b2_ref[...], 0.0)
    # fc3 (no activation)
    out = jnp.dot(h2.astype(w3_ref.dtype), w3_ref[...],
                  preferred_element_type=jnp.float32) + b3_ref[...]
    o_ref[...] = out.astype(o_ref.dtype)


def _pick_batch_tile(batch: int, target: int) -> int:
    """Batch tile: full batch if it fits in one block, else a multiple of 8 sublanes."""
    if batch <= target:
        return batch                      # one block == full array dim -> always legal
    return max(8, (target // 8) * 8)      # tiled path: keep sublane (8) alignment


@functools.partial(jax.jit, static_argnames=("block_batch", "use_bf16"))
def financial_model_forward(x, params, *, block_batch: int = 256, use_bf16: bool = False):
    """x: (B, INPUT_SIZE) float32. params: dict of w1,b1,w2,b2,w3,b3 (weights as (in,out))."""
    B = x.shape[0]
    tb = _pick_batch_tile(B, block_batch)
    grid = (pl.cdiv(B, tb),)

    act_dtype = jnp.bfloat16 if use_bf16 else jnp.float32
    x_in = x.astype(act_dtype)
    w1 = params["w1"].astype(act_dtype)
    w2 = params["w2"].astype(act_dtype)
    w3 = params["w3"].astype(act_dtype)
    b1, b2, b3 = params["b1"], params["b2"], params["b3"]      # biases stay f32

    itemsize = jnp.dtype(act_dtype).itemsize
    weight_bytes = (w1.size + w2.size + w3.size) * itemsize + (b1.size + b2.size + b3.size) * 4
    cost = pl.CostEstimate(
        flops=2 * B * (INPUT_SIZE * HIDDEN_SIZE
                       + HIDDEN_SIZE * HIDDEN2_SIZE
                       + HIDDEN2_SIZE * OUTPUT_SIZE),
        transcendentals=0,
        bytes_accessed=B * INPUT_SIZE * itemsize + B * OUTPUT_SIZE * 4 + weight_bytes,
    )

    return pl.pallas_call(
        _mlp_kernel,
        out_shape=jax.ShapeDtypeStruct((B, OUTPUT_SIZE), jnp.float32),
        grid=grid,
        in_specs=[
            # streamed activation tiles
            pl.BlockSpec((tb, INPUT_SIZE), lambda i: (i, 0)),
            # weights/biases: constant index_map -> resident in VMEM across the grid
            pl.BlockSpec((INPUT_SIZE, HIDDEN_SIZE), lambda i: (0, 0)),
            pl.BlockSpec((1, HIDDEN_SIZE), lambda i: (0, 0)),
            pl.BlockSpec((HIDDEN_SIZE, HIDDEN2_SIZE), lambda i: (0, 0)),
            pl.BlockSpec((1, HIDDEN2_SIZE), lambda i: (0, 0)),
            pl.BlockSpec((HIDDEN2_SIZE, OUTPUT_SIZE), lambda i: (0, 0)),
            pl.BlockSpec((1, OUTPUT_SIZE), lambda i: (0, 0)),
        ],
        out_specs=pl.BlockSpec((tb, OUTPUT_SIZE), lambda i: (i, 0)),
        compiler_params=pltpu.CompilerParams(
            dimension_semantics=("parallel",),   # megacore sharding on v7x
        ),
        cost_estimate=cost,
    )(x_in, w1, b1, w2, b2, w3, b3)


def init_params(key):
    """Deterministic init mimicking nn.Linear default (uniform(-1/sqrt(fan_in), +))."""
    ks = jax.random.split(key, 6)

    def linear(kw, kb, fan_in, fan_out):
        bound = 1.0 / jnp.sqrt(fan_in)
        w = jax.random.uniform(kw, (fan_in, fan_out), jnp.float32, -bound, bound)
        b = jax.random.uniform(kb, (1, fan_out), jnp.float32, -bound, bound)
        return w, b

    w1, b1 = linear(ks[0], ks[1], INPUT_SIZE, HIDDEN_SIZE)
    w2, b2 = linear(ks[2], ks[3], HIDDEN_SIZE, HIDDEN2_SIZE)
    w3, b3 = linear(ks[4], ks[5], HIDDEN2_SIZE, OUTPUT_SIZE)
    return {"w1": w1, "b1": b1, "w2": w2, "b2": b2, "w3": w3, "b3": b3}


def _reference(x, p):
    h1 = jnp.maximum(x @ p["w1"] + p["b1"], 0.0)
    h2 = jnp.maximum(h1 @ p["w2"] + p["b2"], 0.0)
    return h2 @ p["w3"] + p["b3"]


if __name__ == "__main__":
    key = jax.random.PRNGKey(0)
    k_params, k_x_small, k_x_big = jax.random.split(key, 3)

    params = init_params(k_params)

    # 1) Tiny batch (the module's natural inference shape), f32 path, tight check.
    x_small = jax.random.normal(k_x_small, (8, INPUT_SIZE), jnp.float32)
    out_small = jax.block_until_ready(financial_model_forward(x_small, params))
    ref_small = _reference(x_small, params)
    assert out_small.shape == (8, OUTPUT_SIZE)
    assert jnp.allclose(out_small, ref_small, atol=1e-5, rtol=1e-5)

    # 2) Larger batch that exercises the batch grid incl. a partial last block
    #    (1000 rows, TB=256 -> grid of 4 with a 232-row tail), f32 path, tight check.
    x_big = jax.random.normal(k_x_big, (1000, INPUT_SIZE), jnp.float32)
    out_big = jax.block_until_ready(
        financial_model_forward(x_big, params, block_batch=256))
    ref_big = _reference(x_big, params)
    assert out_big.shape == (1000, OUTPUT_SIZE)
    assert jnp.allclose(out_big, ref_big, atol=1e-5, rtol=1e-5)

    # 3) Same batch through the bf16 activation/weight stream (f32 accumulation),
    #    relaxed tolerance per the bf16 precision budget.
    out_bf16 = jax.block_until_ready(
        financial_model_forward(x_big, params, block_batch=256, use_bf16=True))
    ref_bf16 = _reference(x_big.astype(jnp.bfloat16).astype(jnp.float32),
                          {k: (v.astype(jnp.bfloat16).astype(jnp.float32)
                               if k.startswith("w") else v)
                           for k, v in params.items()})
    assert out_bf16.shape == (1000, OUTPUT_SIZE)
    assert jnp.allclose(out_bf16, ref_bf16, atol=1e-1, rtol=1e-1)

    print("KERNEL_OK")
</pallas_src>

<mosaic_0001>
module attributes {stable_mosaic.version = 11 : i64} {
  func.func @_mlp_kernel(%arg0: i32, %arg1: memref<8x5xf32, #tpu.memory_space<vmem>>, %arg2: memref<5x128xf32, #tpu.memory_space<vmem>>, %arg3: memref<1x128xf32, #tpu.memory_space<vmem>>, %arg4: memref<128x64xf32, #tpu.memory_space<vmem>>, %arg5: memref<1x64xf32, #tpu.memory_space<vmem>>, %arg6: memref<64x3xf32, #tpu.memory_space<vmem>>, %arg7: memref<1x3xf32, #tpu.memory_space<vmem>>, %arg8: memref<8x3xf32, #tpu.memory_space<vmem>>) attributes {dimension_semantics = [#tpu.dimension_semantics<parallel>], iteration_bounds = array<i64: 1>, scalar_prefetch = 0 : i64, scratch_operands = 0 : i64, tpu.core_type = #tpu.core_type<tc>, window_params = [{transform_indices = @transform_0, window_bounds = array<i64: 8, 5>}, {pipeline_mode = #tpu.pipeline_mode<synchronous>, transform_indices = @transform_1, window_bounds = array<i64: 5, 128>}, {pipeline_mode = #tpu.pipeline_mode<synchronous>, transform_indices = @transform_2, window_bounds = array<i64: 1, 128>}, {pipeline_mode = #tpu.pipeline_mode<synchronous>, transform_indices = @transform_3, window_bounds = array<i64: 128, 64>}, {pipeline_mode = #tpu.pipeline_mode<synchronous>, transform_indices = @transform_4, window_bounds = array<i64: 1, 64>}, {pipeline_mode = #tpu.pipeline_mode<synchronous>, transform_indices = @transform_5, window_bounds = array<i64: 64, 3>}, {pipeline_mode = #tpu.pipeline_mode<synchronous>, transform_indices = @transform_6, window_bounds = array<i64: 1, 3>}, {transform_indices = @transform_7, window_bounds = array<i64: 8, 3>}]} {
    %c0 = arith.constant 0 : index
    %c0_0 = arith.constant 0 : index
    %0 = vector.load %arg1[%c0, %c0_0] : memref<8x5xf32, #tpu.memory_space<vmem>>, vector<8x5xf32>
    %c0_1 = arith.constant 0 : index
    %c0_2 = arith.constant 0 : index
    %1 = vector.load %arg2[%c0_1, %c0_2] : memref<5x128xf32, #tpu.memory_space<vmem>>, vector<5x128xf32>
    %cst = arith.constant dense<0.000000e+00> : vector<8x128xf32>
    %2 = tpu.matmul %0, %1, %cst {dimension_numbers = #tpu.dot_dimension_numbers<[1], [0], [0], [1], [0, 0, 1, 1], [], []>} : vector<8x5xf32>, vector<5x128xf32>, vector<8x128xf32> -> vector<8x128xf32>
    %c0_3 = arith.constant 0 : index
    %c0_4 = arith.constant 0 : index
    %3 = vector.load %arg3[%c0_3, %c0_4] : memref<1x128xf32, #tpu.memory_space<vmem>>, vector<1x128xf32>
    %4 = vector.broadcast %3 : vector<1x128xf32> to vector<8x128xf32>
    %5 = arith.addf %2, %4 : vector<8x128xf32>
    %cst_5 = arith.constant 0.000000e+00 : f32
    %6 = vector.broadcast %cst_5 : f32 to vector<8x128xf32>
    %7 = arith.maximumf %5, %6 : vector<8x128xf32>
    %c0_6 = arith.constant 0 : index
    %c0_7 = arith.constant 0 : index
    %8 = vector.load %arg4[%c0_6, %c0_7] : memref<128x64xf32, #tpu.memory_space<vmem>>, vector<128x64xf32>
    %cst_8 = arith.constant dense<0.000000e+00> : vector<8x64xf32>
    %9 = tpu.matmul %7, %8, %cst_8 {dimension_numbers = #tpu.dot_dimension_numbers<[1], [0], [0], [1], [0, 0, 1, 1], [], []>} : vector<8x128xf32>, vector<128x64xf32>, vector<8x64xf32> -> vector<8x64xf32>
    %c0_9 = arith.constant 0 : index
    %c0_10 = arith.constant 0 : index
    %10 = vector.load %arg5[%c0_9, %c0_10] : memref<1x64xf32, #tpu.memory_space<vmem>>, vector<1x64xf32>
    %11 = vector.broadcast %10 : vector<1x64xf32> to vector<8x64xf32>
    %12 = arith.addf %9, %11 : vector<8x64xf32>
    %cst_11 = arith.constant 0.000000e+00 : f32
    %13 = vector.broadcast %cst_11 : f32 to vector<8x64xf32>
    %14 = arith.maximumf %12, %13 : vector<8x64xf32>
    %c0_12 = arith.constant 0 : index
    %c0_13 = arith.constant 0 : index
    %15 = vector.load %arg6[%c0_12, %c0_13] : memref<64x3xf32, #tpu.memory_space<vmem>>, vector<64x3xf32>
    %cst_14 = arith.constant dense<0.000000e+00> : vector<8x3xf32>
    %16 = tpu.matmul %14, %15, %cst_14 {dimension_numbers = #tpu.dot_dimension_numbers<[1], [0], [0], [1], [0, 0, 1, 1], [], []>} : vector<8x64xf32>, vector<64x3xf32>, vector<8x3xf32> -> vector<8x3xf32>
    %c0_15 = arith.constant 0 : index
    %c0_16 = arith.constant 0 : index
    %17 = vector.load %arg7[%c0_15, %c0_16] : memref<1x3xf32, #tpu.memory_space<vmem>>, vector<1x3xf32>
    %18 = vector.broadcast %17 : vector<1x3xf32> to vector<8x3xf32>
    %19 = arith.addf %16, %18 : vector<8x3xf32>
    %c0_17 = arith.constant 0 : index
    %c0_18 = arith.constant 0 : index
    %20 = vector.load %arg8[%c0_17, %c0_18] : memref<8x3xf32, #tpu.memory_space<vmem>>, vector<8x3xf32>
    tpu.vector_store %arg8[%c0_17, %c0_18], %19 {strides = array<i32>} : memref<8x3xf32, #tpu.memory_space<vmem>>, vector<8x3xf32>,
    return
  }
  func.func @transform_0(%arg0: i32) -> (i32, i32) {
    %c0_i32 = arith.constant 0 : i32
    %c0_i32_0 = arith.constant 0 : i32
    return %arg0, %c0_i32 : i32, i32
  }
  func.func @transform_1(%arg0: i32) -> (i32, i32) {
    %c0_i32 = arith.constant 0 : i32
    %c0_i32_0 = arith.constant 0 : i32
    %c0_i32_1 = arith.constant 0 : i32
    return %c0_i32, %c0_i32_0 : i32, i32
  }
  func.func @transform_2(%arg0: i32) -> (i32, i32) {
    %c0_i32 = arith.constant 0 : i32
    %c0_i32_0 = arith.constant 0 : i32
    %c0_i32_1 = arith.constant 0 : i32
    return %c0_i32, %c0_i32_0 : i32, i32
  }
  func.func @transform_3(%arg0: i32) -> (i32, i32) {
    %c0_i32 = arith.constant 0 : i32
    %c0_i32_0 = arith.constant 0 : i32
    %c0_i32_1 = arith.constant 0 : i32
    return %c0_i32, %c0_i32_0 : i32, i32
  }
  func.func @transform_4(%arg0: i32) -> (i32, i32) {
    %c0_i32 = arith.constant 0 : i32
    %c0_i32_0 = arith.constant 0 : i32
    %c0_i32_1 = arith.constant 0 : i32
    return %c0_i32, %c0_i32_0 : i32, i32
  }
  func.func @transform_5(%arg0: i32) -> (i32, i32) {
    %c0_i32 = arith.constant 0 : i32
    %c0_i32_0 = arith.constant 0 : i32
    %c0_i32_1 = arith.constant 0 : i32
    return %c0_i32, %c0_i32_0 : i32, i32
  }
  func.func @transform_6(%arg0: i32) -> (i32, i32) {
    %c0_i32 = arith.constant 0 : i32
    %c0_i32_0 = arith.constant 0 : i32
    %c0_i32_1 = arith.constant 0 : i32
    return %c0_i32, %c0_i32_0 : i32, i32
  }
  func.func @transform_7(%arg0: i32) -> (i32, i32) {
    %c0_i32 = arith.constant 0 : i32
    %c0_i32_0 = arith.constant 0 : i32
    return %arg0, %c0_i32 : i32, i32
  }
}

</mosaic_0001>

<bundles_post_ra>
// kernel: financial_model_forward.1
= control target key start
LH: loop header
LB: loop body
LE: loop exit
PB: predicated region body
PF: predicated region fallthrough
CT: control target
= control target key end

     0   :  { %vm39_vm0 = vcmask 1044480   ;;  %vm35_vm1 = vcmask 39936   ;;  %v435_v0 = vmov 0.0   ;;  %vm436_vm2 = vmmov 0   ;;  %s568_s1 = inlined_call_operand.vmem [shape: f32[5,128], index: 1, kind: input, shape index: {}]   ;;  %s569_s0 = inlined_call_operand.vmem [shape: f32[8,5], index: 0, kind: input, shape index: {}]   ;;  %s570_s3 = inlined_call_operand.vmem [shape: f32[128,64], index: 3, kind: input, shape index: {}]   ;;  %s571_s5 = inlined_call_operand.vmem [shape: f32[64,3], index: 5, kind: input, shape index: {}]   ;;  %s572_s2 = inlined_call_operand.vmem [shape: f32[1,128], index: 2, kind: input, shape index: {}]   ;;  %s573_s4 = inlined_call_operand.vmem [shape: f32[1,64], index: 4, kind: input, shape index: {}]   ;;  %s574_s6 = inlined_call_operand.vmem [shape: f32[1,3], index: 6, kind: input, shape index: {}]   ;;  %s575_s7 = inlined_call_operand.vmem [shape: f32[8,3], index: 7, kind: output, shape index: {}]  }
   0x1   :  { %337 = vmatprep.subr.mxu0 %v435_v0  ;;  %v27_v1 = vld [vmem:[%s568_s1] sm:$0x1f]  ;;  %339 = vmatprep.mubr.msk.f32.mxu0 %vm436_vm2, %v435_v0  ;;  %v437_v4 = vmov 0.0|0.0   ;;  %v115_v5 = vld [vmem:[%s570_s3 + $0x8] sm:$0xff]  ;;  %v116_v6 = vld [vmem:[%s570_s3 + $0x10] sm:$0xff]  ;;  %vm223_vm3 = vcmask 523264  }
   0x2   :  { %v26_v2 = vld [vmem:[%s569_s0] sm:$0xff]  ;;  %338 = vmatpush3.msk.msra.mxu0 %vm39_vm0, %v27_v1  ;;  %396 = vmatprep.subr.bf16.mxu1 %v437_v4  ;;  %v117_v7 = vld [vmem:[%s570_s3 + $0x18] sm:$0xff]  ;;  %v119_v11 = vld [vmem:[%s570_s3 + $0x28] sm:$0xff]  ;;  %vm297_vm4 = vcmask 23552  }
   0x3   :  { %v114_v3 = vld [vmem:[%s570_s3] sm:$0xff]  ;;  %340 = vmatmul.mubr.msk.f32.vlgmr.msra.gmra.mrb[0].mxu0 %vm35_vm1, %v26_v2  ;;  %374 = vmatprep.mubr.msk.f32.mxu1 %vm436_vm2, %v435_v0  ;;  %v400_v9 = vpack.c.bf16 %v117_v7, %v116_v6  ;;  %v120_v13 = vld [vmem:[%s570_s3 + $0x30] sm:$0xff]  ;;  %v121_v14 = vld [vmem:[%s570_s3 + $0x38] sm:$0xff] }
   0x4   :  { %v397_v8 = vpack.c.bf16 %v115_v5, %v114_v3  ;;  %420 = vmatprep.subr.bf16.mxu0 %v437_v4  ;;  %393 = vmatprep.mubr.msk.f32.mxu0 %vm436_vm2, %v435_v0  ;;  %v118_v10 = vld [vmem:[%s570_s3 + $0x20] sm:$0xff]  ;;  %v406_v15 = vpack.c.bf16 %v121_v14, %v120_v13  ;;  %v123_v17 = vld [vmem:[%s570_s3 + $0x48] sm:$0xff]  ;;  %v124_v19 = vld [vmem:[%s570_s3 + $0x50] sm:$0xff] }
   0x5   :  { %v403_v12 = vpack.c.bf16 %v119_v11, %v118_v10  ;;  %v122_v16 = vld [vmem:[%s570_s3 + $0x40] sm:$0xff]  ;;  %v125_v20 = vld [vmem:[%s570_s3 + $0x58] sm:$0xff]  ;;  %v127_v23 = vld [vmem:[%s570_s3 + $0x68] sm:$0xff] }
   0x6   :  { %398 = vmatpush3.bf16.msra.mxu1 %v397_v8  ;;  %v409_v18 = vpack.c.bf16 %v123_v17, %v122_v16  ;;  %v412_v21 = vpack.c.bf16 %v125_v20, %v124_v19  ;;  %v126_v22 = vld [vmem:[%s570_s3 + $0x60] sm:$0xff]  ;;  %v128_v25 = vld [vmem:[%s570_s3 + $0x70] sm:$0xff]  ;;  %v129_v26 = vld [vmem:[%s570_s3 + $0x78] sm:$0xff] }
   0x7   :  { %399 = vmatprep.subr.bf16.mxu1 %v437_v4  ;;  %v415_v24 = vpack.c.bf16 %v127_v23, %v126_v22  ;;  %v418_v27 = vpack.c.bf16 %v129_v26, %v128_v25  ;;  %v208_v28 = vld [vmem:[%s571_s5] sm:$0xff]  ;;  %v209_v29 = vld [vmem:[%s571_s5 + $0x8] sm:$0xff]  ;;  %v210_v30 = vld [vmem:[%s571_s5 + $0x10] sm:$0xff] }
   0x8   :  { %v421_v31 = vpack.c.bf16 %v209_v29, %v208_v28  ;;  %v211_v32 = vld [vmem:[%s571_s5 + $0x18] sm:$0xff]  ;;  %v212_v34 = vld [vmem:[%s571_s5 + $0x20] sm:$0xff]  ;;  %v213_v35 = vld [vmem:[%s571_s5 + $0x28] sm:$0xff] }
   0x9   :  { %v424_v33 = vpack.c.bf16 %v211_v32, %v210_v30  ;;  %v427_v36 = vpack.c.bf16 %v213_v35, %v212_v34  ;;  %v303_v37 = vld [vmem:[%s572_s2] ss:$0 sm:$0xff]  ;;  %v214_v42 = vld [vmem:[%s571_s5 + $0x30] sm:$0xff]  ;;  %v215_v43 = vld [vmem:[%s571_s5 + $0x38] sm:$0xff] }
   0xa   :  { %401 = vmatpush3.bf16.msra.mxu1 %v400_v9  ;;  %422 = vmatpush3.bf16.msra.mxu0 %v421_v31  ;;  %v430_v44 = vpack.c.bf16 %v215_v43, %v214_v42  ;;  %v306_v45 = vld [vmem:[%s573_s4] ss:$0 sm:$0xff] }
   0xb   :  { %402 = vmatprep.subr.bf16.mxu1 %v437_v4  ;;  %423 = vmatprep.subr.bf16.mxu0 %v437_v4  ;;  %v307_v50 = vld [vmem:[%s574_s6] ss:$0 sm:$0xff] }
   0xe   :  { %404 = vmatpush3.bf16.msra.mxu1 %v403_v12  ;;  %425 = vmatpush3.bf16.msra.mxu0 %v424_v33 }
   0xf   :  { %405 = vmatprep.subr.bf16.mxu1 %v437_v4  ;;  %426 = vmatprep.subr.bf16.mxu0 %v437_v4 }
  0x12   :  { %407 = vmatpush3.bf16.msra.mxu1 %v406_v15  ;;  %428 = vmatpush3.bf16.msra.mxu0 %v427_v36 }
  0x13   :  { %408 = vmatprep.subr.bf16.mxu1 %v437_v4  ;;  %429 = vmatprep.subr.bf16.mxu0 %v437_v4 }
  0x16   :  { %410 = vmatpush3.bf16.msra.mxu1 %v409_v18  ;;  %431 = vmatpush3.bf16.msra.mxu0 %v430_v44 }
  0x17   :  { %411 = vmatprep.subr.bf16.mxu1 %v437_v4 }
  0x1a   :  { %413 = vmatpush3.bf16.msra.mxu1 %v412_v21 }
  0x1b   :  { %414 = vmatprep.subr.bf16.mxu1 %v437_v4 }
  0x1e   :  { %416 = vmatpush3.bf16.msra.mxu1 %v415_v24 }
  0x1f   :  { %417 = vmatprep.subr.bf16.mxu1 %v437_v4 }
  0x22   :  { %419 = vmatpush3.bf16.msra.mxu1 %v418_v27 }
  0xd6   :  { %v109_v38 = vpop.f32.mrb[0].mxu0 }
  0xd7   :  { %v110_v39 = vadd.f32 %v303_v37, %v109_v38  ;;  %v341_v40 = vpop.f32.mrb[1].mxu0 }
  0xd9   :  { %v113_v41 = vmax.f32 %v110_v39, 0.0 }
  0xdb   :  { %375 = vmatmul.mubr.f32.vlgmr.msra.gmra.mrb[0].mxu1 %v113_v41 }
 0x1ae   :  { %v203_v46 = vpop.f32.mrb[0].mxu1 }
 0x1af   :  { %v204_v47 = vadd.f32 %v306_v45, %v203_v46  ;;  %v376_v48 = vpop.f32.mrb[1].mxu1 }
 0x1b1   :  { %v207_v49 = vmax.f32 %v204_v47, 0.0 }
 0x1b3   :  { %394 = vmatmul.mubr.msk.f32.vlgmr.msra.gmra.mrb[2].mxu0 %vm223_vm3, %v207_v49 }
 0x286   :  { %v293_v51 = vpop.f32.mrb[2].mxu0 }
 0x287   :  { %v294_v52 = vadd.f32 %v307_v50, %v293_v51  ;;  %v395_v53 = vpop.f32.mrb[3].mxu0 }
 0x289   :  { %298 = vst.msk [vmem:[%s575_s7] sm:$0xff] %vm297_vm4, %v294_v52 }

</bundles_post_ra>
